<compile_context>
chip_gen: v7x
topology: tpu7x:2x2x1
jax: 0.10.0
libtpu: 0.0.40
codegen_flags: <defaults>
</compile_context>

<pallas_src>
import functools
import math

import jax
import jax.numpy as jnp
import numpy as np
from jax import lax
from jax.experimental import pallas as pl
from jax.experimental.pallas import tpu as pltpu


# ---------------------------------------------------------------------------
# Fused 4-layer conv+ReLU kernel (one image per grid step).
# ---------------------------------------------------------------------------
def _encoder_kernel(x_ref, w1_ref, b1_ref, w2_ref, b2_ref, w3_ref, b3_ref,
                    w4_ref, b4_ref, o_ref, *, wrow, l1, l2, l3, l4):
    f32, bf16 = jnp.float32, jnp.bfloat16
    cout = w1_ref.shape[2]

    # ---- layer 1: Conv(Cin -> 32, 3x3, stride=2) + bias + ReLU (obs-0.5 fused) ----
    # x_ref[0, ph, pw] is the (Cin, Hh*Wh) even/odd phase plane x[ci, 2i+ph, 2j+pw],
    # so a stride-2 tap is just a contiguous lane slice of one phase plane.
    phases = [[(x_ref[0, ph, pw].astype(f32) - 0.5).astype(bf16) for pw in range(2)]
              for ph in range(2)]
    acc = jnp.zeros((cout, l1), f32)
    for kh in range(3):
        for kw in range(3):
            p = phases[kh % 2][kw % 2]
            off = (kh // 2) * wrow + (kw // 2)
            tap = p[:, off:off + l1]                         # (Cin, L1) bf16
            acc = acc + jnp.dot(w1_ref[kh, kw], tap,         # (32, Cin) @ (Cin, L1)
                                preferred_element_type=f32)
    h = jnp.maximum(acc + b1_ref[...], 0.0)                  # (32, L1) f32, lane-dense

    # ---- layers 2-4: Conv(32 -> 32, 3x3, stride=1) as ONE im2col matmul each ----
    # Wide flattened layout (fixed row stride = wrow): tap (kh,kw) is the lane slice
    # [kh*wrow+kw : kh*wrow+kw + L_out]; concat 9 taps on sublanes (offsets are
    # multiples of 32 -> tile aligned) and do a single (32, 288) @ (288, L) matmul.
    for w_ref, b_ref, l_out in ((w2_ref, b2_ref, l2),
                                (w3_ref, b3_ref, l3),
                                (w4_ref, b4_ref, l4)):
        hb = h.astype(bf16)
        taps = [hb[:, kh * wrow + kw: kh * wrow + kw + l_out]
                for kh in range(3) for kw in range(3)]
        patches = jnp.concatenate(taps, axis=0)              # (288, L_out) bf16
        acc = jnp.dot(w_ref[...], patches,                   # (32, 288) @ (288, L_out)
                      preferred_element_type=f32)
        h = jnp.maximum(acc + b_ref[...], 0.0)               # (32, L_out) f32

    o_ref[0] = h.astype(o_ref.dtype)                         # (32, L4), lane-dense store


# ---------------------------------------------------------------------------
# Wrapper: obs (N, C, H, W) f32  ->  h (N, 32, H', W') f32
# ---------------------------------------------------------------------------
def image_encoder_forward(obs_nchw, packed):
    w1t, b1, w2t, b2, w3t, b3, w4t, b4 = packed
    n, c, h_in, w_in = obs_nchw.shape
    cout = w1t.shape[2]

    x = obs_nchw.astype(jnp.float32)
    # pad spatial dims to even so the stride-2 phase split is a pure reshape
    hp, wp = h_in + (h_in % 2), w_in + (w_in % 2)
    if (hp, wp) != (h_in, w_in):
        x = jnp.pad(x, ((0, 0), (0, 0), (0, hp - h_in), (0, wp - w_in)))
    hh, wh = hp // 2, wp // 2
    # even/odd phase planes: xp[n, ph, pw, ci, i*wh + j] = x[n, ci, 2i+ph, 2j+pw]
    xp = x.reshape(n, c, hh, 2, wh, 2)
    xp = jnp.transpose(xp, (0, 3, 5, 1, 2, 4)).reshape(n, 2, 2, c, hh * wh)

    # conv output sizes (valid, k=3) and "wide" flattened lengths (row stride = wh)
    wrow = wh
    ho1, wo1 = (h_in - 3) // 2 + 1, (w_in - 3) // 2 + 1      # == hh-1, wh-1
    ho2, wo2 = ho1 - 2, wo1 - 2
    ho3, wo3 = ho2 - 2, wo2 - 2
    ho4, wo4 = ho3 - 2, wo3 - 2
    assert ho4 >= 1 and wo4 >= 1, "input spatial dims too small for 4 conv layers"
    l1 = (ho1 - 1) * wrow + wo1
    l2 = (ho2 - 1) * wrow + wo2
    l3 = (ho3 - 1) * wrow + wo3
    l4 = (ho4 - 1) * wrow + wo4

    kernel = functools.partial(_encoder_kernel, wrow=wrow, l1=l1, l2=l2, l3=l3, l4=l4)

    out_wide = pl.pallas_call(
        kernel,
        out_shape=jax.ShapeDtypeStruct((n, cout, l4), jnp.float32),
        grid=(n,),
        in_specs=[
            pl.BlockSpec((1, 2, 2, c, hh * wh), lambda i: (i, 0, 0, 0, 0)),
            pl.BlockSpec(w1t.shape, lambda i: (0, 0, 0, 0)),   # weights stay resident
            pl.BlockSpec(b1.shape, lambda i: (0, 0)),
            pl.BlockSpec(w2t.shape, lambda i: (0, 0)),
            pl.BlockSpec(b2.shape, lambda i: (0, 0)),
            pl.BlockSpec(w3t.shape, lambda i: (0, 0)),
            pl.BlockSpec(b3.shape, lambda i: (0, 0)),
            pl.BlockSpec(w4t.shape, lambda i: (0, 0)),
            pl.BlockSpec(b4.shape, lambda i: (0, 0)),
        ],
        out_specs=pl.BlockSpec((1, cout, l4), lambda i: (i, 0, 0)),
        compiler_params=pltpu.CompilerParams(
            dimension_semantics=("parallel",),         # 2 grid steps -> both v7x cores
            vmem_limit_bytes=32 * 1024 * 1024,         # explicit, safe on v5e/v6e/v7x
        ),
    )(xp, w1t, b1, w2t, b2, w3t, b3, w4t, b4)

    # un-widen in the wrapper (free layout plumbing): valid columns are ow < wo4
    pad = ho4 * wrow - l4                                     # == wrow - wo4
    out = jnp.pad(out_wide, ((0, 0), (0, 0), (0, pad)))
    return out.reshape(n, cout, ho4, wrow)[:, :, :, :wo4]     # NCHW, no transpose needed


# ---------------------------------------------------------------------------
# Parameter init (xavier_normal_ with gain=sqrt(2), bias=0) and kernel packing.
# ---------------------------------------------------------------------------
def init_params(key, obs_channels):
    """Raw parameters matching the PyTorch module: list of (w_oihw f32, b f32, stride)."""
    cfg = [(obs_channels, 32, 2), (32, 32, 1), (32, 32, 1), (32, 32, 1)]
    raw = []
    for cin, cout, stride in cfg:
        key, wk = jax.random.split(key)
        fan_in, fan_out = cin * 9, cout * 9
        std = math.sqrt(2.0) * math.sqrt(2.0 / (fan_in + fan_out))
        w = std * jax.random.normal(wk, (cout, cin, 3, 3), dtype=jnp.float32)
        b = jnp.zeros((cout,), jnp.float32)
        raw.append((w, b, stride))
    return raw


def pack_params(raw):
    """Convert raw OIHW/f32 params to the fused kernel's layouts (bf16 MXU weights)."""
    (w1, b1, _), (w2, b2, _), (w3, b3, _), (w4, b4, _) = raw
    cout = w1.shape[0]
    # layer 1: per-tap (Cout, Cin) matrices indexed [kh, kw]
    w1t = jnp.transpose(w1, (2, 3, 0, 1)).astype(jnp.bfloat16)         # (3,3,Cout,Cin)

    def im2col_w(w):  # (Cout, Cin, 3, 3) -> (Cout, 9*Cin), K ordered (kh, kw, ci)
        co, ci = w.shape[0], w.shape[1]
        return jnp.transpose(w, (0, 2, 3, 1)).reshape(co, 9 * ci).astype(jnp.bfloat16)

    col = lambda b: b.reshape(cout, 1).astype(jnp.float32)             # lane-broadcast bias
    return (w1t, col(b1), im2col_w(w2), col(b2),
            im2col_w(w3), col(b3), im2col_w(w4), col(b4))


# Pure-JAX reference (f32) for correctness checking only.
def reference_forward(obs_nchw, raw):
    x = obs_nchw.astype(jnp.float32) - 0.5
    for w, b, stride in raw:
        x = lax.conv_general_dilated(
            x, w, window_strides=(stride, stride), padding="VALID",
            dimension_numbers=("NCHW", "OIHW", "NCHW"))
        x = jax.nn.relu(x + b.reshape(1, -1, 1, 1))
    return x


if __name__ == "__main__":
    key = jax.random.PRNGKey(0)
    k_obs, k_par = jax.random.split(key)

    N, C, H, W = 2, 4, 16, 16
    obs = jax.random.uniform(k_obs, (N, C, H, W), dtype=jnp.float32)

    raw = init_params(k_par, C)
    packed = pack_params(raw)

    fwd = jax.jit(image_encoder_forward)
    out = jax.block_until_ready(fwd(obs, packed))

    ref = reference_forward(obs, raw)
    assert out.shape == ref.shape, (out.shape, ref.shape)
    # bf16 MXU operands (f32 accumulation) -> loosened tolerance vs f32 reference.
    np.testing.assert_allclose(np.asarray(out), np.asarray(ref), rtol=2e-2, atol=2e-2)

    print("KERNEL_OK")
</pallas_src>

<mosaic_0001>
module attributes {stable_mosaic.version = 11 : i64} {
  func.func @_encoder_kernel(%arg0: i32, %arg1: memref<1x2x2x4x64xf32, #tpu.memory_space<vmem>>, %arg2: memref<3x3x32x4xbf16, #tpu.memory_space<vmem>>, %arg3: memref<32x1xf32, #tpu.memory_space<vmem>>, %arg4: memref<32x288xbf16, #tpu.memory_space<vmem>>, %arg5: memref<32x1xf32, #tpu.memory_space<vmem>>, %arg6: memref<32x288xbf16, #tpu.memory_space<vmem>>, %arg7: memref<32x1xf32, #tpu.memory_space<vmem>>, %arg8: memref<32x288xbf16, #tpu.memory_space<vmem>>, %arg9: memref<32x1xf32, #tpu.memory_space<vmem>>, %arg10: memref<1x32x1xf32, #tpu.memory_space<vmem>>) attributes {dimension_semantics = [#tpu.dimension_semantics<parallel>], iteration_bounds = array<i64: 2>, scalar_prefetch = 0 : i64, scratch_operands = 0 : i64, tpu.core_type = #tpu.core_type<tc>, window_params = [{transform_indices = @transform_0, window_bounds = array<i64: 1, 2, 2, 4, 64>}, {pipeline_mode = #tpu.pipeline_mode<synchronous>, transform_indices = @transform_1, window_bounds = array<i64: 3, 3, 32, 4>}, {pipeline_mode = #tpu.pipeline_mode<synchronous>, transform_indices = @transform_2, window_bounds = array<i64: 32, 1>}, {pipeline_mode = #tpu.pipeline_mode<synchronous>, transform_indices = @transform_3, window_bounds = array<i64: 32, 288>}, {pipeline_mode = #tpu.pipeline_mode<synchronous>, transform_indices = @transform_4, window_bounds = array<i64: 32, 1>}, {pipeline_mode = #tpu.pipeline_mode<synchronous>, transform_indices = @transform_5, window_bounds = array<i64: 32, 288>}, {pipeline_mode = #tpu.pipeline_mode<synchronous>, transform_indices = @transform_6, window_bounds = array<i64: 32, 1>}, {pipeline_mode = #tpu.pipeline_mode<synchronous>, transform_indices = @transform_7, window_bounds = array<i64: 32, 288>}, {pipeline_mode = #tpu.pipeline_mode<synchronous>, transform_indices = @transform_8, window_bounds = array<i64: 32, 1>}, {transform_indices = @transform_9, window_bounds = array<i64: 1, 32, 1>}]} {
    %c0 = arith.constant 0 : index
    %c0_0 = arith.constant 0 : index
    %c0_1 = arith.constant 0 : index
    %c0_2 = arith.constant 0 : index
    %c0_3 = arith.constant 0 : index
    %0 = vector.load %arg1[%c0, %c0_0, %c0_1, %c0_2, %c0_3] : memref<1x2x2x4x64xf32, #tpu.memory_space<vmem>>, vector<1x1x1x4x64xf32>
    %1 = vector.shape_cast %0 : vector<1x1x1x4x64xf32> to vector<4x64xf32>
    %cst = arith.constant 5.000000e-01 : f32
    %2 = vector.broadcast %cst : f32 to vector<4x64xf32>
    %3 = arith.subf %1, %2 : vector<4x64xf32>
    %4 = arith.truncf %3 : vector<4x64xf32> to vector<4x64xbf16>
    %c0_4 = arith.constant 0 : index
    %c0_5 = arith.constant 0 : index
    %c1 = arith.constant 1 : index
    %c0_6 = arith.constant 0 : index
    %c0_7 = arith.constant 0 : index
    %5 = vector.load %arg1[%c0_4, %c0_5, %c1, %c0_6, %c0_7] : memref<1x2x2x4x64xf32, #tpu.memory_space<vmem>>, vector<1x1x1x4x64xf32>
    %6 = vector.shape_cast %5 : vector<1x1x1x4x64xf32> to vector<4x64xf32>
    %cst_8 = arith.constant 5.000000e-01 : f32
    %7 = vector.broadcast %cst_8 : f32 to vector<4x64xf32>
    %8 = arith.subf %6, %7 : vector<4x64xf32>
    %9 = arith.truncf %8 : vector<4x64xf32> to vector<4x64xbf16>
    %c0_9 = arith.constant 0 : index
    %c1_10 = arith.constant 1 : index
    %c0_11 = arith.constant 0 : index
    %c0_12 = arith.constant 0 : index
    %c0_13 = arith.constant 0 : index
    %10 = vector.load %arg1[%c0_9, %c1_10, %c0_11, %c0_12, %c0_13] : memref<1x2x2x4x64xf32, #tpu.memory_space<vmem>>, vector<1x1x1x4x64xf32>
    %11 = vector.shape_cast %10 : vector<1x1x1x4x64xf32> to vector<4x64xf32>
    %cst_14 = arith.constant 5.000000e-01 : f32
    %12 = vector.broadcast %cst_14 : f32 to vector<4x64xf32>
    %13 = arith.subf %11, %12 : vector<4x64xf32>
    %14 = arith.truncf %13 : vector<4x64xf32> to vector<4x64xbf16>
    %c0_15 = arith.constant 0 : index
    %c1_16 = arith.constant 1 : index
    %c1_17 = arith.constant 1 : index
    %c0_18 = arith.constant 0 : index
    %c0_19 = arith.constant 0 : index
    %15 = vector.load %arg1[%c0_15, %c1_16, %c1_17, %c0_18, %c0_19] : memref<1x2x2x4x64xf32, #tpu.memory_space<vmem>>, vector<1x1x1x4x64xf32>
    %16 = vector.shape_cast %15 : vector<1x1x1x4x64xf32> to vector<4x64xf32>
    %cst_20 = arith.constant 5.000000e-01 : f32
    %17 = vector.broadcast %cst_20 : f32 to vector<4x64xf32>
    %18 = arith.subf %16, %17 : vector<4x64xf32>
    %19 = arith.truncf %18 : vector<4x64xf32> to vector<4x64xbf16>
    %cst_21 = arith.constant 0.000000e+00 : f32
    %20 = vector.broadcast %cst_21 : f32 to vector<32x55xf32>
    %21 = vector.extract_strided_slice %4 {offsets = [0, 0], sizes = [4, 55], strides = [1, 1]} : vector<4x64xbf16> to vector<4x55xbf16>
    %c0_22 = arith.constant 0 : index
    %c0_23 = arith.constant 0 : index
    %c0_24 = arith.constant 0 : index
    %c0_25 = arith.constant 0 : index
    %22 = vector.load %arg2[%c0_22, %c0_23, %c0_24, %c0_25] : memref<3x3x32x4xbf16, #tpu.memory_space<vmem>>, vector<1x1x32x4xbf16>
    %23 = vector.shape_cast %22 : vector<1x1x32x4xbf16> to vector<32x4xbf16>
    %cst_26 = arith.constant dense<0.000000e+00> : vector<32x55xf32>
    %24 = tpu.matmul %23, %21, %cst_26 {dimension_numbers = #tpu.dot_dimension_numbers<[1], [0], [0], [1], [0, 0, 1, 1], [], []>} : vector<32x4xbf16>, vector<4x55xbf16>, vector<32x55xf32> -> vector<32x55xf32>
    %25 = arith.addf %20, %24 : vector<32x55xf32>
    %26 = vector.extract_strided_slice %9 {offsets = [0, 0], sizes = [4, 55], strides = [1, 1]} : vector<4x64xbf16> to vector<4x55xbf16>
    %c0_27 = arith.constant 0 : index
    %c1_28 = arith.constant 1 : index
    %c0_29 = arith.constant 0 : index
    %c0_30 = arith.constant 0 : index
    %27 = vector.load %arg2[%c0_27, %c1_28, %c0_29, %c0_30] : memref<3x3x32x4xbf16, #tpu.memory_space<vmem>>, vector<1x1x32x4xbf16>
    %28 = vector.shape_cast %27 : vector<1x1x32x4xbf16> to vector<32x4xbf16>
    %cst_31 = arith.constant dense<0.000000e+00> : vector<32x55xf32>
    %29 = tpu.matmul %28, %26, %cst_31 {dimension_numbers = #tpu.dot_dimension_numbers<[1], [0], [0], [1], [0, 0, 1, 1], [], []>} : vector<32x4xbf16>, vector<4x55xbf16>, vector<32x55xf32> -> vector<32x55xf32>
    %30 = arith.addf %25, %29 : vector<32x55xf32>
    %31 = vector.extract_strided_slice %4 {offsets = [0, 1], sizes = [4, 55], strides = [1, 1]} : vector<4x64xbf16> to vector<4x55xbf16>
    %c0_32 = arith.constant 0 : index
    %c2 = arith.constant 2 : index
    %c0_33 = arith.constant 0 : index
    %c0_34 = arith.constant 0 : index
    %32 = vector.load %arg2[%c0_32, %c2, %c0_33, %c0_34] : memref<3x3x32x4xbf16, #tpu.memory_space<vmem>>, vector<1x1x32x4xbf16>
    %33 = vector.shape_cast %32 : vector<1x1x32x4xbf16> to vector<32x4xbf16>
    %cst_35 = arith.constant dense<0.000000e+00> : vector<32x55xf32>
    %34 = tpu.matmul %33, %31, %cst_35 {dimension_numbers = #tpu.dot_dimension_numbers<[1], [0], [0], [1], [0, 0, 1, 1], [], []>} : vector<32x4xbf16>, vector<4x55xbf16>, vector<32x55xf32> -> vector<32x55xf32>
    %35 = arith.addf %30, %34 : vector<32x55xf32>
    %36 = vector.extract_strided_slice %14 {offsets = [0, 0], sizes = [4, 55], strides = [1, 1]} : vector<4x64xbf16> to vector<4x55xbf16>
    %c1_36 = arith.constant 1 : index
    %c0_37 = arith.constant 0 : index
    %c0_38 = arith.constant 0 : index
    %c0_39 = arith.constant 0 : index
    %37 = vector.load %arg2[%c1_36, %c0_37, %c0_38, %c0_39] : memref<3x3x32x4xbf16, #tpu.memory_space<vmem>>, vector<1x1x32x4xbf16>
    %38 = vector.shape_cast %37 : vector<1x1x32x4xbf16> to vector<32x4xbf16>
    %cst_40 = arith.constant dense<0.000000e+00> : vector<32x55xf32>
    %39 = tpu.matmul %38, %36, %cst_40 {dimension_numbers = #tpu.dot_dimension_numbers<[1], [0], [0], [1], [0, 0, 1, 1], [], []>} : vector<32x4xbf16>, vector<4x55xbf16>, vector<32x55xf32> -> vector<32x55xf32>
    %40 = arith.addf %35, %39 : vector<32x55xf32>
    %41 = vector.extract_strided_slice %19 {offsets = [0, 0], sizes = [4, 55], strides = [1, 1]} : vector<4x64xbf16> to vector<4x55xbf16>
    %c1_41 = arith.constant 1 : index
    %c1_42 = arith.constant 1 : index
    %c0_43 = arith.constant 0 : index
    %c0_44 = arith.constant 0 : index
    %42 = vector.load %arg2[%c1_41, %c1_42, %c0_43, %c0_44] : memref<3x3x32x4xbf16, #tpu.memory_space<vmem>>, vector<1x1x32x4xbf16>
    %43 = vector.shape_cast %42 : vector<1x1x32x4xbf16> to vector<32x4xbf16>
    %cst_45 = arith.constant dense<0.000000e+00> : vector<32x55xf32>
    %44 = tpu.matmul %43, %41, %cst_45 {dimension_numbers = #tpu.dot_dimension_numbers<[1], [0], [0], [1], [0, 0, 1, 1], [], []>} : vector<32x4xbf16>, vector<4x55xbf16>, vector<32x55xf32> -> vector<32x55xf32>
    %45 = arith.addf %40, %44 : vector<32x55xf32>
    %46 = vector.extract_strided_slice %14 {offsets = [0, 1], sizes = [4, 55], strides = [1, 1]} : vector<4x64xbf16> to vector<4x55xbf16>
    %c1_46 = arith.constant 1 : index
    %c2_47 = arith.constant 2 : index
    %c0_48 = arith.constant 0 : index
    %c0_49 = arith.constant 0 : index
    %47 = vector.load %arg2[%c1_46, %c2_47, %c0_48, %c0_49] : memref<3x3x32x4xbf16, #tpu.memory_space<vmem>>, vector<1x1x32x4xbf16>
    %48 = vector.shape_cast %47 : vector<1x1x32x4xbf16> to vector<32x4xbf16>
    %cst_50 = arith.constant dense<0.000000e+00> : vector<32x55xf32>
    %49 = tpu.matmul %48, %46, %cst_50 {dimension_numbers = #tpu.dot_dimension_numbers<[1], [0], [0], [1], [0, 0, 1, 1], [], []>} : vector<32x4xbf16>, vector<4x55xbf16>, vector<32x55xf32> -> vector<32x55xf32>
    %50 = arith.addf %45, %49 : vector<32x55xf32>
    %51 = vector.extract_strided_slice %4 {offsets = [0, 8], sizes = [4, 55], strides = [1, 1]} : vector<4x64xbf16> to vector<4x55xbf16>
    %c2_51 = arith.constant 2 : index
    %c0_52 = arith.constant 0 : index
    %c0_53 = arith.constant 0 : index
    %c0_54 = arith.constant 0 : index
    %52 = vector.load %arg2[%c2_51, %c0_52, %c0_53, %c0_54] : memref<3x3x32x4xbf16, #tpu.memory_space<vmem>>, vector<1x1x32x4xbf16>
    %53 = vector.shape_cast %52 : vector<1x1x32x4xbf16> to vector<32x4xbf16>
    %cst_55 = arith.constant dense<0.000000e+00> : vector<32x55xf32>
    %54 = tpu.matmul %53, %51, %cst_55 {dimension_numbers = #tpu.dot_dimension_numbers<[1], [0], [0], [1], [0, 0, 1, 1], [], []>} : vector<32x4xbf16>, vector<4x55xbf16>, vector<32x55xf32> -> vector<32x55xf32>
    %55 = arith.addf %50, %54 : vector<32x55xf32>
    %56 = vector.extract_strided_slice %9 {offsets = [0, 8], sizes = [4, 55], strides = [1, 1]} : vector<4x64xbf16> to vector<4x55xbf16>
    %c2_56 = arith.constant 2 : index
    %c1_57 = arith.constant 1 : index
    %c0_58 = arith.constant 0 : index
    %c0_59 = arith.constant 0 : index
    %57 = vector.load %arg2[%c2_56, %c1_57, %c0_58, %c0_59] : memref<3x3x32x4xbf16, #tpu.memory_space<vmem>>, vector<1x1x32x4xbf16>
    %58 = vector.shape_cast %57 : vector<1x1x32x4xbf16> to vector<32x4xbf16>
    %cst_60 = arith.constant dense<0.000000e+00> : vector<32x55xf32>
    %59 = tpu.matmul %58, %56, %cst_60 {dimension_numbers = #tpu.dot_dimension_numbers<[1], [0], [0], [1], [0, 0, 1, 1], [], []>} : vector<32x4xbf16>, vector<4x55xbf16>, vector<32x55xf32> -> vector<32x55xf32>
    %60 = arith.addf %55, %59 : vector<32x55xf32>
    %61 = vector.extract_strided_slice %4 {offsets = [0, 9], sizes = [4, 55], strides = [1, 1]} : vector<4x64xbf16> to vector<4x55xbf16>
    %c2_61 = arith.constant 2 : index
    %c2_62 = arith.constant 2 : index
    %c0_63 = arith.constant 0 : index
    %c0_64 = arith.constant 0 : index
    %62 = vector.load %arg2[%c2_61, %c2_62, %c0_63, %c0_64] : memref<3x3x32x4xbf16, #tpu.memory_space<vmem>>, vector<1x1x32x4xbf16>
    %63 = vector.shape_cast %62 : vector<1x1x32x4xbf16> to vector<32x4xbf16>
    %cst_65 = arith.constant dense<0.000000e+00> : vector<32x55xf32>
    %64 = tpu.matmul %63, %61, %cst_65 {dimension_numbers = #tpu.dot_dimension_numbers<[1], [0], [0], [1], [0, 0, 1, 1], [], []>} : vector<32x4xbf16>, vector<4x55xbf16>, vector<32x55xf32> -> vector<32x55xf32>
    %65 = arith.addf %60, %64 : vector<32x55xf32>
    %c0_66 = arith.constant 0 : index
    %c0_67 = arith.constant 0 : index
    %66 = vector.load %arg3[%c0_66, %c0_67] : memref<32x1xf32, #tpu.memory_space<vmem>>, vector<32x1xf32>
    %67 = vector.broadcast %66 : vector<32x1xf32> to vector<32x55xf32>
    %68 = arith.addf %65, %67 : vector<32x55xf32>
    %cst_68 = arith.constant 0.000000e+00 : f32
    %69 = vector.broadcast %cst_68 : f32 to vector<32x55xf32>
    %70 = arith.maximumf %68, %69 : vector<32x55xf32>
    %71 = arith.truncf %70 : vector<32x55xf32> to vector<32x55xbf16>
    %72 = vector.extract_strided_slice %71 {offsets = [0, 0], sizes = [32, 37], strides = [1, 1]} : vector<32x55xbf16> to vector<32x37xbf16>
    %73 = vector.extract_strided_slice %71 {offsets = [0, 1], sizes = [32, 37], strides = [1, 1]} : vector<32x55xbf16> to vector<32x37xbf16>
    %74 = vector.extract_strided_slice %71 {offsets = [0, 2], sizes = [32, 37], strides = [1, 1]} : vector<32x55xbf16> to vector<32x37xbf16>
    %75 = vector.extract_strided_slice %71 {offsets = [0, 8], sizes = [32, 37], strides = [1, 1]} : vector<32x55xbf16> to vector<32x37xbf16>
    %76 = vector.extract_strided_slice %71 {offsets = [0, 9], sizes = [32, 37], strides = [1, 1]} : vector<32x55xbf16> to vector<32x37xbf16>
    %77 = vector.extract_strided_slice %71 {offsets = [0, 10], sizes = [32, 37], strides = [1, 1]} : vector<32x55xbf16> to vector<32x37xbf16>
    %78 = vector.extract_strided_slice %71 {offsets = [0, 16], sizes = [32, 37], strides = [1, 1]} : vector<32x55xbf16> to vector<32x37xbf16>
    %79 = vector.extract_strided_slice %71 {offsets = [0, 17], sizes = [32, 37], strides = [1, 1]} : vector<32x55xbf16> to vector<32x37xbf16>
    %80 = vector.extract_strided_slice %71 {offsets = [0, 18], sizes = [32, 37], strides = [1, 1]} : vector<32x55xbf16> to vector<32x37xbf16>
    %81 = tpu.concatenate %72, %73, %74, %75, %76, %77, %78, %79, %80 in 0 : vector<32x37xbf16>, vector<32x37xbf16>, vector<32x37xbf16>, vector<32x37xbf16>, vector<32x37xbf16>, vector<32x37xbf16>, vector<32x37xbf16>, vector<32x37xbf16>, vector<32x37xbf16> -> vector<288x37xbf16>
    %c0_69 = arith.constant 0 : index
    %c0_70 = arith.constant 0 : index
    %82 = vector.load %arg4[%c0_69, %c0_70] : memref<32x288xbf16, #tpu.memory_space<vmem>>, vector<32x288xbf16>
    %cst_71 = arith.constant dense<0.000000e+00> : vector<32x37xf32>
    %83 = tpu.matmul %82, %81, %cst_71 {dimension_numbers = #tpu.dot_dimension_numbers<[1], [0], [0], [1], [0, 0, 1, 1], [], []>} : vector<32x288xbf16>, vector<288x37xbf16>, vector<32x37xf32> -> vector<32x37xf32>
    %c0_72 = arith.constant 0 : index
    %c0_73 = arith.constant 0 : index
    %84 = vector.load %arg5[%c0_72, %c0_73] : memref<32x1xf32, #tpu.memory_space<vmem>>, vector<32x1xf32>
    %85 = vector.broadcast %84 : vector<32x1xf32> to vector<32x37xf32>
    %86 = arith.addf %83, %85 : vector<32x37xf32>
    %cst_74 = arith.constant 0.000000e+00 : f32
    %87 = vector.broadcast %cst_74 : f32 to vector<32x37xf32>
    %88 = arith.maximumf %86, %87 : vector<32x37xf32>
    %89 = arith.truncf %88 : vector<32x37xf32> to vector<32x37xbf16>
    %90 = vector.extract_strided_slice %89 {offsets = [0, 0], sizes = [32, 19], strides = [1, 1]} : vector<32x37xbf16> to vector<32x19xbf16>
    %91 = vector.extract_strided_slice %89 {offsets = [0, 1], sizes = [32, 19], strides = [1, 1]} : vector<32x37xbf16> to vector<32x19xbf16>
    %92 = vector.extract_strided_slice %89 {offsets = [0, 2], sizes = [32, 19], strides = [1, 1]} : vector<32x37xbf16> to vector<32x19xbf16>
    %93 = vector.extract_strided_slice %89 {offsets = [0, 8], sizes = [32, 19], strides = [1, 1]} : vector<32x37xbf16> to vector<32x19xbf16>
    %94 = vector.extract_strided_slice %89 {offsets = [0, 9], sizes = [32, 19], strides = [1, 1]} : vector<32x37xbf16> to vector<32x19xbf16>
    %95 = vector.extract_strided_slice %89 {offsets = [0, 10], sizes = [32, 19], strides = [1, 1]} : vector<32x37xbf16> to vector<32x19xbf16>
    %96 = vector.extract_strided_slice %89 {offsets = [0, 16], sizes = [32, 19], strides = [1, 1]} : vector<32x37xbf16> to vector<32x19xbf16>
    %97 = vector.extract_strided_slice %89 {offsets = [0, 17], sizes = [32, 19], strides = [1, 1]} : vector<32x37xbf16> to vector<32x19xbf16>
    %98 = vector.extract_strided_slice %89 {offsets = [0, 18], sizes = [32, 19], strides = [1, 1]} : vector<32x37xbf16> to vector<32x19xbf16>
    %99 = tpu.concatenate %90, %91, %92, %93, %94, %95, %96, %97, %98 in 0 : vector<32x19xbf16>, vector<32x19xbf16>, vector<32x19xbf16>, vector<32x19xbf16>, vector<32x19xbf16>, vector<32x19xbf16>, vector<32x19xbf16>, vector<32x19xbf16>, vector<32x19xbf16> -> vector<288x19xbf16>
    %c0_75 = arith.constant 0 : index
    %c0_76 = arith.constant 0 : index
    %100 = vector.load %arg6[%c0_75, %c0_76] : memref<32x288xbf16, #tpu.memory_space<vmem>>, vector<32x288xbf16>
    %cst_77 = arith.constant dense<0.000000e+00> : vector<32x19xf32>
    %101 = tpu.matmul %100, %99, %cst_77 {dimension_numbers = #tpu.dot_dimension_numbers<[1], [0], [0], [1], [0, 0, 1, 1], [], []>} : vector<32x288xbf16>, vector<288x19xbf16>, vector<32x19xf32> -> vector<32x19xf32>
    %c0_78 = arith.constant 0 : index
    %c0_79 = arith.constant 0 : index
    %102 = vector.load %arg7[%c0_78, %c0_79] : memref<32x1xf32, #tpu.memory_space<vmem>>, vector<32x1xf32>
    %103 = vector.broadcast %102 : vector<32x1xf32> to vector<32x19xf32>
    %104 = arith.addf %101, %103 : vector<32x19xf32>
    %cst_80 = arith.constant 0.000000e+00 : f32
    %105 = vector.broadcast %cst_80 : f32 to vector<32x19xf32>
    %106 = arith.maximumf %104, %105 : vector<32x19xf32>
    %107 = arith.truncf %106 : vector<32x19xf32> to vector<32x19xbf16>
    %108 = vector.extract_strided_slice %107 {offsets = [0, 0], sizes = [32, 1], strides = [1, 1]} : vector<32x19xbf16> to vector<32x1xbf16>
    %109 = vector.extract_strided_slice %107 {offsets = [0, 1], sizes = [32, 1], strides = [1, 1]} : vector<32x19xbf16> to vector<32x1xbf16>
    %110 = vector.extract_strided_slice %107 {offsets = [0, 2], sizes = [32, 1], strides = [1, 1]} : vector<32x19xbf16> to vector<32x1xbf16>
    %111 = vector.extract_strided_slice %107 {offsets = [0, 8], sizes = [32, 1], strides = [1, 1]} : vector<32x19xbf16> to vector<32x1xbf16>
    %112 = vector.extract_strided_slice %107 {offsets = [0, 9], sizes = [32, 1], strides = [1, 1]} : vector<32x19xbf16> to vector<32x1xbf16>
    %113 = vector.extract_strided_slice %107 {offsets = [0, 10], sizes = [32, 1], strides = [1, 1]} : vector<32x19xbf16> to vector<32x1xbf16>
    %114 = vector.extract_strided_slice %107 {offsets = [0, 16], sizes = [32, 1], strides = [1, 1]} : vector<32x19xbf16> to vector<32x1xbf16>
    %115 = vector.extract_strided_slice %107 {offsets = [0, 17], sizes = [32, 1], strides = [1, 1]} : vector<32x19xbf16> to vector<32x1xbf16>
    %116 = vector.extract_strided_slice %107 {offsets = [0, 18], sizes = [32, 1], strides = [1, 1]} : vector<32x19xbf16> to vector<32x1xbf16>
    %117 = tpu.concatenate %108, %109, %110, %111, %112, %113, %114, %115, %116 in 0 : vector<32x1xbf16>, vector<32x1xbf16>, vector<32x1xbf16>, vector<32x1xbf16>, vector<32x1xbf16>, vector<32x1xbf16>, vector<32x1xbf16>, vector<32x1xbf16>, vector<32x1xbf16> -> vector<288x1xbf16>
    %c0_81 = arith.constant 0 : index
    %c0_82 = arith.constant 0 : index
    %118 = vector.load %arg8[%c0_81, %c0_82] : memref<32x288xbf16, #tpu.memory_space<vmem>>, vector<32x288xbf16>
    %cst_83 = arith.constant dense<0.000000e+00> : vector<32x1xf32>
    %119 = tpu.matmul %118, %117, %cst_83 {dimension_numbers = #tpu.dot_dimension_numbers<[1], [0], [0], [1], [0, 0, 1, 1], [], []>} : vector<32x288xbf16>, vector<288x1xbf16>, vector<32x1xf32> -> vector<32x1xf32>
    %c0_84 = arith.constant 0 : index
    %c0_85 = arith.constant 0 : index
    %120 = vector.load %arg9[%c0_84, %c0_85] : memref<32x1xf32, #tpu.memory_space<vmem>>, vector<32x1xf32>
    %121 = arith.addf %119, %120 : vector<32x1xf32>
    %cst_86 = arith.constant 0.000000e+00 : f32
    %122 = vector.broadcast %cst_86 : f32 to vector<32x1xf32>
    %123 = arith.maximumf %121, %122 : vector<32x1xf32>
    %c0_87 = arith.constant 0 : index
    %c0_88 = arith.constant 0 : index
    %c0_89 = arith.constant 0 : index
    %124 = vector.load %arg10[%c0_87, %c0_88, %c0_89] : memref<1x32x1xf32, #tpu.memory_space<vmem>>, vector<1x32x1xf32>
    %125 = vector.shape_cast %124 : vector<1x32x1xf32> to vector<32x1xf32>
    %126 = vector.shape_cast %123 : vector<32x1xf32> to vector<1x32x1xf32>
    tpu.vector_store %arg10[%c0_87, %c0_88, %c0_89], %126 {strides = array<i32>} : memref<1x32x1xf32, #tpu.memory_space<vmem>>, vector<1x32x1xf32>,
    return
  }
  func.func @transform_0(%arg0: i32) -> (i32, i32, i32, i32, i32) {
    %c0_i32 = arith.constant 0 : i32
    %c0_i32_0 = arith.constant 0 : i32
    %c0_i32_1 = arith.constant 0 : i32
    %c0_i32_2 = arith.constant 0 : i32
    %c0_i32_3 = arith.constant 0 : i32
    return %arg0, %c0_i32, %c0_i32_0, %c0_i32_1, %c0_i32_2 : i32, i32, i32, i32, i32
  }
  func.func @transform_1(%arg0: i32) -> (i32, i32, i32, i32) {
    %c0_i32 = arith.constant 0 : i32
    %c0_i32_0 = arith.constant 0 : i32
    %c0_i32_1 = arith.constant 0 : i32
    %c0_i32_2 = arith.constant 0 : i32
    %c0_i32_3 = arith.constant 0 : i32
    return %c0_i32, %c0_i32_0, %c0_i32_1, %c0_i32_2 : i32, i32, i32, i32
  }
  func.func @transform_2(%arg0: i32) -> (i32, i32) {
    %c0_i32 = arith.constant 0 : i32
    %c0_i32_0 = arith.constant 0 : i32
    %c0_i32_1 = arith.constant 0 : i32
    return %c0_i32, %c0_i32_0 : i32, i32
  }
  func.func @transform_3(%arg0: i32) -> (i32, i32) {
    %c0_i32 = arith.constant 0 : i32
    %c0_i32_0 = arith.constant 0 : i32
    %c0_i32_1 = arith.constant 0 : i32
    return %c0_i32, %c0_i32_0 : i32, i32
  }
  func.func @transform_4(%arg0: i32) -> (i32, i32) {
    %c0_i32 = arith.constant 0 : i32
    %c0_i32_0 = arith.constant 0 : i32
    %c0_i32_1 = arith.constant 0 : i32
    return %c0_i32, %c0_i32_0 : i32, i32
  }
  func.func @transform_5(%arg0: i32) -> (i32, i32) {
    %c0_i32 = arith.constant 0 : i32
    %c0_i32_0 = arith.constant 0 : i32
    %c0_i32_1 = arith.constant 0 : i32
    return %c0_i32, %c0_i32_0 : i32, i32
  }
  func.func @transform_6(%arg0: i32) -> (i32, i32) {
    %c0_i32 = arith.constant 0 : i32
    %c0_i32_0 = arith.constant 0 : i32
    %c0_i32_1 = arith.constant 0 : i32
    return %c0_i32, %c0_i32_0 : i32, i32
  }
  func.func @transform_7(%arg0: i32) -> (i32, i32) {
    %c0_i32 = arith.constant 0 : i32
    %c0_i32_0 = arith.constant 0 : i32
    %c0_i32_1 = arith.constant 0 : i32
    return %c0_i32, %c0_i32_0 : i32, i32
  }
  func.func @transform_8(%arg0: i32) -> (i32, i32) {
    %c0_i32 = arith.constant 0 : i32
    %c0_i32_0 = arith.constant 0 : i32
    %c0_i32_1 = arith.constant 0 : i32
    return %c0_i32, %c0_i32_0 : i32, i32
  }
  func.func @transform_9(%arg0: i32) -> (i32, i32, i32) {
    %c0_i32 = arith.constant 0 : i32
    %c0_i32_0 = arith.constant 0 : i32
    %c0_i32_1 = arith.constant 0 : i32
    return %arg0, %c0_i32, %c0_i32_0 : i32, i32, i32
  }
}

</mosaic_0001>

<bundles_post_ra>
// kernel: image_encoder_forward.1
= control target key start
LH: loop header
LB: loop body
LE: loop exit
PB: predicated region body
PF: predicated region fallthrough
CT: control target
= control target key end

     0   :  { %s2269_s30 = smov 0   ;;  %s2551_s0 = inlined_call_operand.vmem [shape: f32[2,2,2,4,64], index: 0, kind: input, shape index: {}]   ;;  %s2552_s1 = inlined_call_operand.vmem [shape: bf16[3,3,32,4], index: 1, kind: input, shape index: {}]   ;;  %s2553_s2 = inlined_call_operand.vmem [shape: f32[32,1], index: 2, kind: input, shape index: {}]   ;;  %s2554_s3 = inlined_call_operand.vmem [shape: bf16[32,288], index: 3, kind: input, shape index: {}]   ;;  %s2555_s4 = inlined_call_operand.vmem [shape: f32[32,1], index: 4, kind: input, shape index: {}]   ;;  %s2556_s5 = inlined_call_operand.vmem [shape: bf16[32,288], index: 5, kind: input, shape index: {}]   ;;  %s2557_s6 = inlined_call_operand.vmem [shape: f32[32,1], index: 6, kind: input, shape index: {}]   ;;  %s2558_s7 = inlined_call_operand.vmem [shape: bf16[32,288], index: 7, kind: input, shape index: {}]   ;;  %s2559_s8 = inlined_call_operand.vmem [shape: f32[32,1], index: 8, kind: input, shape index: {}]   ;;  %s2560_s9 = inlined_call_operand.vmem [shape: f32[2,32,1], index: 9, kind: output, shape index: {}]  }
   0x1 LB: > { %s1787_s10 = sadd.s32 4294967295, %s2208_s30   ;;  %p1791_p0 = scmp.ge.s32.totalorder %s2208_s30, 1  ;;  %s2208_s30 = sphi %s2269_s30, %s19_s30  }
   0x2   : > { %p287_p1 = scmp.lt.s32.totalorder %s2208_s30, 3 }
   0x4   : > { %p288_p2 = pnand %p1791_p0, %p287_p1 }
   0x5   : > { %p323_p3 = scmp.lt.s32.totalorder (!%p288_p2), %s1787_s10, 1  ;;  %vm368_vm0 = vcmask (!%p288_p2), 31744   ;;  %v2160_v0 = vld [vmem:[%s2552_s1] sm:$0xff] (!%p288_p2)   ;;  %vm375_vm1 = vcmask (!%p288_p2), 1041408   ;;  %v2161_v9 = vld [vmem:[%s2552_s1 + $0x8] sm:$0xff] (!%p288_p2)   ;;  %s2210_s19 = smov (!%p288_p2), 127  }
   0x6   : > { %291 = sbr.rel (%p288_p2) target bundleno = 1574 (0x626), region = 56  ;;  %2030 = vmatprep.mubr.msk.bf16.mxu0 (!%p288_p2), %vm368_vm0, %v2160_v0  ;;  %s2211_s20 = smov (!%p288_p2), 120   ;;  %v2162_v12 = vld [vmem:[%s2552_s1 + $0x20] sm:$0xff] (!%p288_p2)   ;;  %v2174_v14 = vld [vmem:[%s2552_s1 + $0x10] sm:$0xff] (!%p288_p2)   ;;  %v2176_v15 = vld [vmem:[%s2552_s1 + $0x18] sm:$0xff] (!%p288_p2)   ;;  %v2213_v17 = vmov (!%p288_p2), 0  }
   0x7   : > { %s2212_s23 = smov (!%p288_p2), 119   ;;  %2024 = vmatprep.mubr.msk.bf16.mxu1 (!%p288_p2), %vm368_vm0, %v2174_v14  ;;  %v1048_v16 = vld [vmem:[%s2553_s2] sm:$0xff] (!%p288_p2)  ;;  %2158 = vset.pattern.permute.xlu1 (!%p288_p2), %v2213_v17  ;;  %v1049_v18 = vld [vmem:[%s2553_s2 + $0x8] sm:$0xff] (!%p288_p2)  ;;  %v1050_v19 = vld [vmem:[%s2553_s2 + $0x10] sm:$0xff] (!%p288_p2)  ;;  %s2214_s11 = smov (!%p288_p2), 118   ;;  %vm1194_vm2 = vcmask (!%p288_p2), 261120  }
   0x8   : > { %2159 = vset.pattern.permute.xlu0 (!%p288_p2), %v2213_v17  ;;  %v1051_v20 = vld [vmem:[%s2553_s2 + $0x18] sm:$0xff] (!%p288_p2)  ;;  %v2163_v25 = vld [vmem:[%s2552_s1 + $0x28] sm:$0xff] (!%p288_p2)   ;;  %v2164_v26 = vld [vmem:[%s2552_s1 + $0x30] sm:$0xff] (!%p288_p2)   ;;  %s2215_s12 = smov (!%p288_p2), 126   ;;  %s2217_s17 = smov (!%p288_p2), 111   ;;  %vm1727_vm3 = vcmask (!%p288_p2), 7168  }
   0x9   : > { %v2165_v29 = vld [vmem:[%s2552_s1 + $0x38] sm:$0xff] (!%p288_p2)   ;;  %v2166_v30 = vld [vmem:[%s2552_s1 + $0x40] sm:$0xff] (!%p288_p2)   ;;  %v2167_v33 = vld [vmem:[%s2552_s1 + $0x48] sm:$0xff] (!%p288_p2)   ;;  %s2218_s18 = smov (!%p288_p2), 110  }
   0xa   : > { %v2168_v34 = vld [vmem:[%s2552_s1 + $0x50] sm:$0xff] (!%p288_p2)   ;;  %v2169_v37 = vld [vmem:[%s2552_s1 + $0x58] sm:$0xff] (!%p288_p2)   ;;  %v2170_v38 = vld [vmem:[%s2552_s1 + $0x60] sm:$0xff] (!%p288_p2)  }
   0xb   : > { %v2171_v41 = vld [vmem:[%s2552_s1 + $0x68] sm:$0xff] (!%p288_p2)   ;;  %v2172_v42 = vld [vmem:[%s2552_s1 + $0x70] sm:$0xff] (!%p288_p2)   ;;  %v2173_v45 = vld [vmem:[%s2552_s1 + $0x78] sm:$0xff] (!%p288_p2)  }
   0xc   : > { %v2175_v46 = vld [vmem:[%s2552_s1 + $0x80] sm:$0xff] (!%p288_p2)   ;;  %v2177_v48 = vld [vmem:[%s2552_s1 + $0x88] sm:$0xff] (!%p288_p2)   ;;  %v1143_v14 = vld [vmem:[%s2555_s4 + $0x18] sm:$0xff] (!%p288_p2) }
   0xd   : > { %s2562_s10 = smov (!%p323_p3, %s1787_s10), 1 }
   0xe   : > { %s1897_s13 = sshll.u32 %s2562_s10, 4  ;;  %s1898_s24 = sshll.u32 %s2562_s10, 5 }
   0xf   : > { %s2287_s16 = scalar_lea.vmem %s2551_s0, %s1897_s13  ;;  %s2216_s13 = smov 112  }
  0x10   : > { %v334_v1 = vld [vmem:[%s2287_s16] sm:$0xf]  ;;  %v1799_v2 = vld [vmem:[%s2287_s16 + $0x8] sm:$0xf]  ;;  %v1797_v3 = vld [vmem:[%s2287_s16 + $0x4] sm:$0xf]  ;;  %s332_s26 = scalar_lea.vmem %s2560_s9, %s1898_s24 }
  0x11   : > { %v1796_v4 = vadd.f32 -0.5, %v334_v1  ;;  %v1800_v5 = vadd.f32 -0.5, %v1799_v2  ;;  %v1798_v6 = vadd.f32 -0.5, %v1797_v3  ;;  %v1801_v21 = vld [vmem:[%s2287_s16 + $0xc] sm:$0xf] }
  0x12   : > { %v1802_v22 = vadd.f32 -0.5, %v1801_v21 }
  0x13   : > { %v336_v7 = vpack.c.bf16 %v1796_v4, %v1796_v4  ;;  %v340_v8 = vpack.c.bf16 %v1798_v6, %v1798_v6  ;;  %v344_v10 = vpack.c.bf16 %v1800_v5, %v1800_v5 }
  0x14   : > { %v348_v28 = vpack.c.bf16 %v1802_v22, %v1802_v22 }
  0x15   : > { %512 = vrot.lane.b32.xlu0 %v336_v7, %s2210_s19  ;;  %825 = vrot.lane.b32.xlu1 %v336_v7, %s2211_s20  ;;  %v445_v11 = vsel %vm375_vm1, %v336_v7, 0  ;;  %v377_v13 = vsel %vm375_vm1, %v340_v8, 0  ;;  %v598_v27 = vsel %vm375_vm1, %v344_v10, 0 }
  0x16   : > { %2133 = vmatprep.subr.msk.bf16.mxu0 %vm375_vm1, %v336_v7  ;;  %2132 = vmatprep.subr.msk.bf16.mxu1 %vm375_vm1, %v340_v8  ;;  %v675_v31 = vsel %vm375_vm1, %v348_v28, 0 }
  0x17   : > { %2029 = vmatpush3.bf16.msra.mxu0 %v445_v11  ;;  %2023 = vmatpush3.bf16.msra.mxu1 %v377_v13  ;;  %v2180_v11 = vld [vmem:[%s2554_s3 + $0x4] ss:$12 sps:$4 sm:$0xff]  }
  0x18   : > { %v1140_v13 = vld [vmem:[%s2555_s4] sm:$0xff] }
  0x19   : > { %746 = vrot.lane.b32.xlu0 %v344_v10, %s2210_s19  ;;  %905 = vrot.lane.b32.xlu1 %v340_v8, %s2211_s20 }
  0x1a   : > { %2031 = vmatmul.mubr.msk.bf16.vlgmr.msra.gmra.mrb[0].mxu0 %vm368_vm0, %v2161_v9  ;;  %2025 = vmatmul.mubr.msk.bf16.vlgmr.msra.gmra.mrb[0].mxu1 %vm368_vm0, %v2176_v15  ;;  %v1142_v15 = vld [vmem:[%s2555_s4 + $0x10] sm:$0xff] }
  0x1b   : > { %2036 = vmatprep.mubr.msk.bf16.mxu0 %vm368_vm0, %v2162_v12  ;;  %1233 = vmatprep.mubr.bf16.mxu1 %v2180_v11  ;;  %v1141_v12 = vld [vmem:[%s2555_s4 + $0x8] sm:$0xff]  ;;  %v1366_v11 = vld [vmem:[%s2557_s6 + $0x18] sm:$0xff] }
  0x1d   : > { %984 = vrot.lane.b32.xlu0 %v336_v7, %s2212_s23  ;;  %1054 = vperm.xlu1 %2158, %v1048_v16  }
  0x21   : > { %1059 = vperm.xlu0 %2159, %v1049_v18   ;;  %1064 = vperm.xlu1 %2158, %v1050_v19  }
  0x25   : > { %1069 = vperm.xlu1 %2158, %v1051_v20  }
  0x87   : > { %v513_v23 = vpop.permute.xlu0 %512  ;;  %v826_v36 = vpop.permute.xlu1 %825 }
  0x88   : > { %v521_v24 = vsel %vm375_vm1, %v513_v23, 0  ;;  %2134 = vmatprep.subr.msk.bf16.mxu0 %vm375_vm1, %v513_v23  ;;  %v834_v39 = vsel %vm375_vm1, %v826_v36, 0 }
  0x89   : > { %2035 = vmatpush3.bf16.msra.mxu0 %v521_v24 }
  0x8a   : > { %2135 = vmatprep.subr.msk.bf16.mxu0 %vm375_vm1, %v344_v10 }
  0x8b   : > { %v747_v32 = vpop.permute.xlu0 %746  ;;  %v906_v40 = vpop.permute.xlu1 %905 }
  0x8c   : > { %2037 = vmatmul.mubr.msk.bf16.vlgmr.msra.gmra.mrb[0].mxu0 %vm368_vm0, %v2163_v25  ;;  %v755_v35 = vsel %vm375_vm1, %v747_v32, 0  ;;  %v914_v43 = vsel %vm375_vm1, %v906_v40, 0 }
  0x8d   : > { %2041 = vmatpush3.bf16.msra.mxu0 %v598_v27  ;;  %2042 = vmatprep.mubr.msk.bf16.mxu0 %vm368_vm0, %v2164_v26 }
  0x8e   : > { %2136 = vmatprep.subr.msk.bf16.mxu0 %vm375_vm1, %v348_v28 }
  0x8f   : > { %v985_v44 = vpop.permute.xlu0 %984 }
  0x90   : > { %v993_v47 = vsel %vm375_vm1, %v985_v44, 0 }
  0x98   : > { %2043 = vmatmul.mubr.msk.bf16.vlgmr.msra.gmra.mrb[0].mxu0 %vm368_vm0, %v2165_v29 }
  0x99   : > { %2047 = vmatpush3.bf16.msra.mxu0 %v675_v31  ;;  %2048 = vmatprep.mubr.msk.bf16.mxu0 %vm368_vm0, %v2166_v30  ;;  %v2178_v30 = vld [vmem:[%s2554_s3] ss:$12 sps:$4 sm:$0xff]  }
  0x9a   : > { %2137 = vmatprep.subr.msk.bf16.mxu0 %vm375_vm1, %v747_v32  ;;  %v2181_v32 = vld [vmem:[%s2554_s3 + $0x1c] ss:$12 sps:$4 sm:$0xff]  }
  0x9c   : > { %v1055_v53 = vpop.permute.xlu1 %1054 }
  0xa0   : > { %v1065_v54 = vpop.permute.xlu1 %1064  ;;  %v1060_v63 = vpop.permute.xlu0 %1059 }
  0xa4   : > { %2049 = vmatmul.mubr.msk.bf16.vlgmr.msra.gmra.mrb[0].mxu0 %vm368_vm0, %v2167_v33  ;;  %v1070_v2 = vpop.permute.xlu1 %1069 }
  0xa5   : > { %2053 = vmatpush3.bf16.msra.mxu0 %v755_v35  ;;  %2054 = vmatprep.mubr.msk.bf16.mxu0 %vm368_vm0, %v2168_v34  ;;  %v2183_v34 = vld [vmem:[%s2554_s3 + $0x18] ss:$12 sps:$4 sm:$0xff]   ;;  %v2184_v35 = vld [vmem:[%s2554_s3 + $0x8] ss:$12 sps:$4 sm:$0xff]  }
  0xa6   : > { %2138 = vmatprep.subr.msk.bf16.mxu0 %vm375_vm1, %v826_v36  ;;  %v2185_v36 = vld [vmem:[%s2554_s3 + $0x20] ss:$12 sps:$4 sm:$0xff]  }
  0xb0   : > { %2055 = vmatmul.mubr.msk.bf16.vlgmr.msra.gmra.mrb[0].mxu0 %vm368_vm0, %v2169_v37 }
  0xb1   : > { %2059 = vmatpush3.bf16.msra.mxu0 %v834_v39  ;;  %2060 = vmatprep.mubr.msk.bf16.mxu0 %vm368_vm0, %v2170_v38 }
  0xb2   : > { %2139 = vmatprep.subr.msk.bf16.mxu0 %vm375_vm1, %v906_v40 }
  0xbc   : > { %2061 = vmatmul.mubr.msk.bf16.vlgmr.msra.gmra.mrb[0].mxu0 %vm368_vm0, %v2171_v41 }
  0xbd   : > { %2065 = vmatpush3.bf16.msra.mxu0 %v914_v43  ;;  %2066 = vmatprep.mubr.msk.bf16.mxu0 %vm368_vm0, %v2172_v42 }
  0xbe   : > { %2140 = vmatprep.subr.msk.bf16.mxu0 %vm375_vm1, %v985_v44 }
  0xc8   : > { %2067 = vmatmul.mubr.msk.bf16.vlgmr.msra.gmra.mrb[0].mxu0 %vm368_vm0, %v2173_v45 }
  0xc9   : > { %2071 = vmatpush3.bf16.msra.mxu0 %v993_v47  ;;  %2072 = vmatprep.mubr.msk.bf16.mxu0 %vm368_vm0, %v2175_v46 }
  0xd4   : > { %2073 = vmatmul.mubr.msk.bf16.vlgmr.msra.gmra.mrb[0].mxu0 %vm368_vm0, %v2177_v48 }
  0xed   : > { %v2026_v49 = vpop.f32.mrb[0].mxu1 }
  0xee   : > { %v413_v50 = vpop.f32.mrb[1].mxu1 }
  0xef   : > { %v2027_v51 = vpop.f32.mrb[2].mxu1 }
  0xf0   : > { %v416_v52 = vpop.f32.mrb[3].mxu1 }
 0x1a7   : > { %v2074_v55 = vpop.f32.mrb[0].mxu0 }
 0x1a8   : > { %v2100_v56 = vadd.f32 %v2074_v55, %v2026_v49  ;;  %v1029_v57 = vpop.f32.mrb[1].mxu0 }
 0x1a9   : > { %v2101_v58 = vadd.f32 %v1029_v57, %v413_v50  ;;  %v2075_v59 = vpop.f32.mrb[2].mxu0 }
 0x1aa   : > { %v1074_v60 = vadd.f32 %v2100_v56, %v1065_v54  ;;  %v2102_v61 = vadd.f32 %v2075_v59, %v2027_v51  ;;  %v1032_v62 = vpop.f32.mrb[3].mxu0 }
 0x1ab   : > { %v1072_v0 = vadd.f32 %v2101_v58, %v1055_v53  ;;  %v2103_v1 = vadd.f32 %v1032_v62, %v416_v52 }
 0x1ac   : > { %v1075_v3 = vadd.f32 %v2102_v61, %v1070_v2  ;;  %v1078_v5 = vmax.f32 %v1074_v60, 0.0 }
 0x1ad   : > { %v1073_v4 = vadd.f32 %v2103_v1, %v1060_v63  ;;  %v1076_v7 = vmax.f32 %v1072_v0, 0.0 }
 0x1ae   : > { %v1079_v6 = vmax.f32 %v1075_v3, 0.0 }
 0x1af   : > { %v1077_v8 = vmax.f32 %v1073_v4, 0.0 }
 0x1b0   : > { %v1081_v9 = vpack.c.bf16 %v1079_v6, %v1078_v5 }
 0x1b1   : > { %v1080_v10 = vpack.c.bf16 %v1077_v8, %v1076_v7  ;;  %v2188_v7 = vld [vmem:[%s2556_s5 + $0x4] ss:$12 sps:$4 sm:$0xff]   ;;  %v2189_v8 = vld [vmem:[%s2556_s5 + $0x8] ss:$12 sps:$4 sm:$0xff]  }
 0x1b2   : > { %1104 = vrot.lane.b32.xlu1 %v1081_v9, %s2212_s23  ;;  %2088 = vmatprep.mubr.msk.bf16.mxu0 %vm1194_vm2, %v2189_v8 }
 0x1b3   : > { %1102 = vrot.lane.b32.xlu0 %v1080_v10, %s2212_s23 }
 0x1b6   : > { %1084 = vrot.lane.b32.xlu1 %v1080_v10, %s2210_s19 }
 0x1b7   : > { %1108 = vrot.lane.b32.xlu0 %v1080_v10, %s2214_s11 }
 0x1ba   : > { %1086 = vrot.lane.b32.xlu1 %v1081_v9, %s2210_s19 }
 0x1bb   : > { %1110 = vrot.lane.b32.xlu0 %v1081_v9, %s2214_s11 }
 0x1be   : > { %1090 = vrot.lane.b32.xlu1 %v1080_v10, %s2215_s12 }
 0x1bf   : > { %1114 = vrot.lane.b32.xlu0 %v1080_v10, %s2216_s13 }
 0x1c2   : > { %1092 = vrot.lane.b32.xlu1 %v1081_v9, %s2215_s12 }
 0x1c3   : > { %1116 = vrot.lane.b32.xlu0 %v1081_v9, %s2216_s13 }
 0x1c6   : > { %1096 = vrot.lane.b32.xlu1 %v1080_v10, %s2211_s20 }
 0x1c7   : > { %1120 = vrot.lane.b32.xlu0 %v1080_v10, %s2217_s17 }
 0x1ca   : > { %1098 = vrot.lane.b32.xlu1 %v1081_v9, %s2211_s20 }
 0x1cb   : > { %1122 = vrot.lane.b32.xlu0 %v1081_v9, %s2217_s17 }
 0x1ce   : > { %1128 = vrot.lane.b32.xlu1 %v1081_v9, %s2218_s18 }
 0x1cf   : > { %1126 = vrot.lane.b32.xlu0 %v1080_v10, %s2218_s18 }
 0x1d2   : > { %1151 = vperm.xlu1 %2158, %v1141_v12   ;;  %v1365_v12 = vld [vmem:[%s2557_s6 + $0x10] sm:$0xff] }
 0x1d3   : > { %1146 = vperm.xlu0 %2159, %v1140_v13  }
 0x1d6   : > { %1161 = vperm.xlu1 %2158, %v1143_v14  }
 0x1d7   : > { %1156 = vperm.xlu0 %2159, %v1142_v15  }
 0x224   : > { %v1105_v16 = vpop.permute.xlu1 %1104 }
 0x225   : > { %v1103_v17 = vpop.permute.xlu0 %1102 }
 0x226   : > { %1926 = vmatprep.subr.bf16.mxu1 %v1103_v17 }
 0x227   : > { %1927 = vmatpush3.bf16.msra.mxu1 %v1080_v10  ;;  %v1363_v10 = vld [vmem:[%s2557_s6] sm:$0xff] }
 0x228   : > { %v1085_v18 = vpop.permute.xlu1 %1084  ;;  %1928 = vmatprep.subr.bf16.mxu1 %v1105_v16 }
 0x229   : > { %v1109_v19 = vpop.permute.xlu0 %1108 }
 0x22b   : > { %1929 = vmatpush3.bf16.msra.mxu1 %v1081_v9  ;;  %v1364_v9 = vld [vmem:[%s2557_s6 + $0x8] sm:$0xff] }
 0x22c   : > { %v1087_v20 = vpop.permute.xlu1 %1086  ;;  %1930 = vmatprep.subr.bf16.mxu1 %v1109_v19 }
 0x22d   : > { %v1111_v21 = vpop.permute.xlu0 %1110 }
 0x22f   : > { %1931 = vmatpush3.bf16.msra.mxu1 %v1085_v18 }
 0x230   : > { %v1091_v22 = vpop.permute.xlu1 %1090  ;;  %1932 = vmatprep.subr.bf16.mxu1 %v1111_v21 }
 0x231   : > { %v1115_v23 = vpop.permute.xlu0 %1114 }
 0x233   : > { %1933 = vmatpush3.bf16.msra.mxu1 %v1087_v20 }
 0x234   : > { %1934 = vmatprep.subr.bf16.mxu1 %v1115_v23  ;;  %v1093_v24 = vpop.permute.xlu1 %1092 }
 0x235   : > { %v1117_v25 = vpop.permute.xlu0 %1116 }
 0x237   : > { %1935 = vmatpush3.bf16.msra.mxu1 %v1091_v22 }
 0x238   : > { %1936 = vmatprep.subr.bf16.mxu1 %v1117_v25  ;;  %v1097_v27 = vpop.permute.xlu1 %1096 }
 0x239   : > { %v1121_v26 = vpop.permute.xlu0 %1120 }
 0x23b   : > { %1937 = vmatpush3.bf16.msra.mxu1 %v1093_v24 }
 0x23c   : > { %1938 = vmatprep.subr.bf16.mxu1 %v1121_v26  ;;  %v1099_v29 = vpop.permute.xlu1 %1098 }
 0x23d   : > { %v1123_v28 = vpop.permute.xlu0 %1122 }
 0x23f   : > { %1939 = vmatpush3.bf16.msra.mxu1 %v1097_v27 }
 0x240   : > { %1940 = vmatprep.subr.bf16.mxu1 %v1123_v28  ;;  %v1129_v33 = vpop.permute.xlu1 %1128  ;;  %v2186_v28 = vld [vmem:[%s2556_s5] ss:$12 sps:$4 sm:$0xff]  }
 0x241   : > { %v1127_v31 = vpop.permute.xlu0 %1126 }
 0x243   : > { %1941 = vmatpush3.bf16.msra.mxu1 %v1099_v29 }
 0x244   : > { %2076 = vmatprep.subr.bf16.mxu1 %v1127_v31 }
 0x246   : > { %1234 = vmatmul.mubr.bf16.vlgmr.msra.gmra.mrb[4].mxu1 %v2178_v30  ;;  %v2191_v30 = vld [vmem:[%s2556_s5 + $0x1c] ss:$12 sps:$4 sm:$0xff]  }
 0x247   : > { %2077 = vmatpush3.bf16.msra.mxu1 %v1127_v31  ;;  %1241 = vmatprep.mubr.bf16.mxu1 %v2181_v32  ;;  %v2190_v31 = vld [vmem:[%s2556_s5 + $0x20] ss:$12 sps:$4 sm:$0xff]   ;;  %v2193_v32 = vld [vmem:[%s2556_s5 + $0x18] ss:$12 sps:$4 sm:$0xff]  }
 0x248   : > { %2078 = vmatprep.subr.bf16.mxu1 %v1129_v33 }
 0x24b   : > { %2079 = vmatpush3.bf16.msra.mxu1 %v1129_v33 }
 0x24e   : > { %1242 = vmatmul.mubr.bf16.gmra.mrb[8].mxu1 %v2183_v34 }
 0x24f   : > { %2080 = vmatprep.mubr.msk.bf16.mxu1 %vm1194_vm2, %v2184_v35 }
 0x251   : > { %v1152_v46 = vpop.permute.xlu1 %1151 }
 0x252   : > { %v1147_v43 = vpop.permute.xlu0 %1146 }
 0x255   : > { %v1162_v53 = vpop.permute.xlu1 %1161 }
 0x256   : > { %2081 = vmatmul.mubr.msk.bf16.vlgmr.msra.gmra.mrb[12].mxu1 %vm1194_vm2, %v2185_v36  ;;  %v1157_v51 = vpop.permute.xlu0 %1156 }
 0x257   : > { %1455 = vmatprep.mubr.bf16.mxu1 %v2188_v7 }
 0x319   : > { %v1942_v37 = vpop.f32.mrb[4].mxu1 }
 0x31a   : > { %v1943_v38 = vpop.f32.mrb[5].mxu1 }
 0x31b   : > { %v1944_v39 = vadd.f32 %v1943_v38, %v1942_v37  ;;  %v1945_v40 = vpop.f32.mrb[6].mxu1 }
 0x31c   : > { %v1946_v41 = vpop.f32.mrb[7].mxu1 }
 0x31d   : > { %v1947_v42 = vadd.f32 %v1946_v41, %v1945_v40  ;;  %v1236_v55 = vadd.f32 %v1944_v39, %v1147_v43 }
 0x31f   : > { %v1239_v61 = vadd.f32 %v1947_v42, %v1152_v46 }
 0x321   : > { %v1948_v44 = vpop.f32.mrb[8].mxu1 }
 0x322   : > { %v1949_v45 = vpop.f32.mrb[9].mxu1 }
 0x323   : > { %v1950_v47 = vadd.f32 %v1949_v45, %v1948_v44  ;;  %v1951_v48 = vpop.f32.mrb[10].mxu1 }
 0x324   : > { %v1952_v49 = vpop.f32.mrb[11].mxu1 }
 0x325   : > { %v1953_v50 = vadd.f32 %v1952_v49, %v1951_v48  ;;  %v1244_v52 = vadd.f32 %v1950_v47, %v1157_v51 }
 0x327   : > { %v1247_v58 = vadd.f32 %v1953_v50, %v1162_v53 }
 0x329   : > { %v2082_v54 = vpop.f32.mrb[12].mxu1 }
 0x32a   : > { %v1293_v56 = vadd.f32 %v2082_v54, %v1244_v52  ;;  %v1284_v57 = vpop.f32.mrb[13].mxu1 }
 0x32b   : > { %v1285_v59 = vadd.f32 %v1284_v57, %v1236_v55  ;;  %v2083_v60 = vpop.f32.mrb[14].mxu1 }
 0x32c   : > { %v1296_v62 = vadd.f32 %v2083_v60, %v1247_v58  ;;  %v1287_v63 = vpop.f32.mrb[15].mxu1  ;;  %v1301_v1 = vmax.f32 %v1293_v56, 0.0 }
 0x32d   : > { %v1288_v0 = vadd.f32 %v1287_v63, %v1239_v61  ;;  %v1299_v3 = vmax.f32 %v1285_v59, 0.0 }
 0x32e   : > { %v1302_v2 = vmax.f32 %v1296_v62, 0.0 }
 0x32f   : > { %v1300_v4 = vmax.f32 %v1288_v0, 0.0 }
 0x330   : > { %v1304_v5 = vpack.c.bf16 %v1302_v2, %v1301_v1 }
 0x331   : > { %v1303_v6 = vpack.c.bf16 %v1300_v4, %v1299_v3  ;;  %v2196_v3 = vld [vmem:[%s2558_s7 + $0x4] ss:$12 sps:$4 sm:$0xff]   ;;  %v2197_v4 = vld [vmem:[%s2558_s7 + $0x8] ss:$12 sps:$4 sm:$0xff]  }
 0x332   : > { %1327 = vrot.lane.b32.xlu1 %v1304_v5, %s2212_s23 }
 0x333   : > { %1325 = vrot.lane.b32.xlu0 %v1303_v6, %s2212_s23 }
 0x336   : > { %1307 = vrot.lane.b32.xlu1 %v1303_v6, %s2210_s19 }
 0x337   : > { %1331 = vrot.lane.b32.xlu0 %v1303_v6, %s2214_s11 }
 0x33a   : > { %1309 = vrot.lane.b32.xlu1 %v1304_v5, %s2210_s19 }
 0x33b   : > { %1333 = vrot.lane.b32.xlu0 %v1304_v5, %s2214_s11 }
 0x33e   : > { %1313 = vrot.lane.b32.xlu1 %v1303_v6, %s2215_s12 }
 0x33f   : > { %1337 = vrot.lane.b32.xlu0 %v1303_v6, %s2216_s13 }
 0x342   : > { %1315 = vrot.lane.b32.xlu1 %v1304_v5, %s2215_s12 }
 0x343   : > { %1339 = vrot.lane.b32.xlu0 %v1304_v5, %s2216_s13 }
 0x346   : > { %1319 = vrot.lane.b32.xlu1 %v1303_v6, %s2211_s20 }
 0x347   : > { %1343 = vrot.lane.b32.xlu0 %v1303_v6, %s2217_s17 }
 0x34a   : > { %1321 = vrot.lane.b32.xlu1 %v1304_v5, %s2211_s20 }
 0x34b   : > { %1345 = vrot.lane.b32.xlu0 %v1304_v5, %s2217_s17 }
 0x34e   : > { %1351 = vrot.lane.b32.xlu1 %v1304_v5, %s2218_s18 }
 0x34f   : > { %1349 = vrot.lane.b32.xlu0 %v1303_v6, %s2218_s18 }
 0x352   : > { %1374 = vperm.xlu1 %2158, %v1364_v9  }
 0x353   : > { %1369 = vperm.xlu0 %2159, %v1363_v10  }
 0x356   : > { %1384 = vperm.xlu1 %2158, %v1366_v11  }
 0x357   : > { %1379 = vperm.xlu0 %2159, %v1365_v12  }
 0x3a4   : > { %v1328_v13 = vpop.permute.xlu1 %1327 }
 0x3a5   : > { %v1326_v14 = vpop.permute.xlu0 %1325 }
 0x3a6   : > { %1958 = vmatprep.subr.bf16.mxu1 %v1326_v14 }
 0x3a7   : > { %1959 = vmatpush3.bf16.msra.mxu1 %v1303_v6 }
 0x3a8   : > { %v1308_v15 = vpop.permute.xlu1 %1307  ;;  %1960 = vmatprep.subr.bf16.mxu1 %v1328_v13 }
 0x3a9   : > { %v1332_v16 = vpop.permute.xlu0 %1331 }
 0x3ab   : > { %1961 = vmatpush3.bf16.msra.mxu1 %v1304_v5 }
 0x3ac   : > { %v1310_v17 = vpop.permute.xlu1 %1309  ;;  %1962 = vmatprep.subr.bf16.mxu1 %v1332_v16 }
 0x3ad   : > { %v1334_v18 = vpop.permute.xlu0 %1333 }
 0x3af   : > { %1963 = vmatpush3.bf16.msra.mxu1 %v1308_v15 }
 0x3b0   : > { %v1314_v19 = vpop.permute.xlu1 %1313  ;;  %1964 = vmatprep.subr.bf16.mxu1 %v1334_v18 }
 0x3b1   : > { %v1338_v20 = vpop.permute.xlu0 %1337 }
 0x3b3   : > { %1965 = vmatpush3.bf16.msra.mxu1 %v1310_v17 }
 0x3b4   : > { %v1316_v21 = vpop.permute.xlu1 %1315  ;;  %1966 = vmatprep.subr.bf16.mxu1 %v1338_v20  ;;  %v2194_v20 = vld [vmem:[%s2558_s7] ss:$12 sps:$4 sm:$0xff]  }
 0x3b5   : > { %v1340_v22 = vpop.permute.xlu0 %1339 }
 0x3b7   : > { %1967 = vmatpush3.bf16.msra.mxu1 %v1314_v19 }
 0x3b8   : > { %v1320_v23 = vpop.permute.xlu1 %1319  ;;  %1968 = vmatprep.subr.bf16.mxu1 %v1340_v22 }
 0x3b9   : > { %v1344_v24 = vpop.permute.xlu0 %1343 }
 0x3bb   : > { %1969 = vmatpush3.bf16.msra.mxu1 %v1316_v21  ;;  %v2199_v21 = vld [vmem:[%s2558_s7 + $0x1c] ss:$12 sps:$4 sm:$0xff]  }
 0x3bc   : > { %1970 = vmatprep.subr.bf16.mxu1 %v1344_v24  ;;  %v1322_v25 = vpop.permute.xlu1 %1321  ;;  %v2201_v24 = vld [vmem:[%s2558_s7 + $0x18] ss:$12 sps:$4 sm:$0xff]  }
 0x3bd   : > { %v1346_v26 = vpop.permute.xlu0 %1345 }
 0x3bf   : > { %1971 = vmatpush3.bf16.msra.mxu1 %v1320_v23  ;;  %v2198_v23 = vld [vmem:[%s2558_s7 + $0x20] ss:$12 sps:$4 sm:$0xff]  }
 0x3c0   : > { %1972 = vmatprep.subr.bf16.mxu1 %v1346_v26  ;;  %v1352_v29 = vpop.permute.xlu1 %1351 }
 0x3c1   : > { %v1350_v27 = vpop.permute.xlu0 %1349 }
 0x3c2   : > { %2084 = vmatprep.subr.bf16.mxu0 %v1350_v27 }
 0x3c3   : > { %1973 = vmatpush3.bf16.msra.mxu1 %v1322_v25  ;;  %2085 = vmatpush3.bf16.msra.mxu0 %v1350_v27  ;;  %v1585_v27 = vld [vmem:[%s2559_s8] sm:$0xff] }
 0x3c4   : > { %2086 = vmatprep.subr.bf16.mxu0 %v1352_v29 }
 0x3c6   : > { %1456 = vmatmul.mubr.bf16.vlgmr.msra.gmra.mrb[16].mxu1 %v2186_v28 }
 0x3c7   : > { %2087 = vmatpush3.bf16.msra.mxu0 %v1352_v29  ;;  %1463 = vmatprep.mubr.bf16.mxu1 %v2191_v30 }
 0x3ca   : > { %2089 = vmatmul.mubr.msk.bf16.vlgmr.msra.gmra.mrb[4].mxu0 %vm1194_vm2, %v2190_v31  ;;  %v1586_v31 = vld [vmem:[%s2559_s8 + $0x8] sm:$0xff] }
 0x3cb   : > { %1657 = vmatprep.mubr.bf16.mxu0 %v2196_v3 }
 0x3ce   : > { %1464 = vmatmul.mubr.bf16.gmra.mrb[20].mxu1 %v2193_v32 }
 0x3cf   : > { %2096 = vmatprep.mubr.msk.bf16.mxu1 %vm1194_vm2, %v2197_v4 }
 0x3d1   : > { %v1375_v42 = vpop.permute.xlu1 %1374 }
 0x3d2   : > { %v1370_v37 = vpop.permute.xlu0 %1369 }
 0x3d5   : > { %v1385_v60 = vpop.permute.xlu1 %1384 }
 0x3d6   : > { %v1380_v55 = vpop.permute.xlu0 %1379 }
 0x499   : > { %v1974_v33 = vpop.f32.mrb[16].mxu1 }
 0x49a   : > { %v1975_v34 = vpop.f32.mrb[17].mxu1 }
 0x49b   : > { %v1976_v35 = vadd.f32 %v1975_v34, %v1974_v33  ;;  %v1977_v36 = vpop.f32.mrb[18].mxu1 }
 0x49c   : > { %v1978_v38 = vpop.f32.mrb[19].mxu1 }
 0x49d   : > { %v1979_v39 = vadd.f32 %v1978_v38, %v1977_v36  ;;  %v2090_v40 = vpop.f32.mrb[4].mxu0  ;;  %v1458_v41 = vadd.f32 %v1976_v35, %v1370_v37 }
 0x49e   : > { %v1506_v43 = vpop.f32.mrb[5].mxu0 }
 0x49f   : > { %v1507_v44 = vadd.f32 %v1506_v43, %v1458_v41  ;;  %v2091_v45 = vpop.f32.mrb[6].mxu0  ;;  %v1461_v46 = vadd.f32 %v1979_v39, %v1375_v42  ;;  %v1587_v43 = vld [vmem:[%s2559_s8 + $0x10] sm:$0xff] }
 0x4a0   : > { %v1509_v47 = vpop.f32.mrb[7].mxu0 }
 0x4a1   : > { %v1510_v48 = vadd.f32 %v1509_v47, %v1461_v46  ;;  %v1980_v49 = vpop.f32.mrb[20].mxu1  ;;  %v1521_v51 = vmax.f32 %v1507_v44, 0.0 }
 0x4a2   : > { %v1981_v50 = vpop.f32.mrb[21].mxu1 }
 0x4a3   : > { %v1522_v52 = vmax.f32 %v1510_v48, 0.0  ;;  %v1982_v53 = vadd.f32 %v1981_v50, %v1980_v49  ;;  %v1983_v54 = vpop.f32.mrb[22].mxu1  ;;  %v1588_v48 = vld [vmem:[%s2559_s8 + $0x18] sm:$0xff] }
 0x4a4   : > { %v1984_v56 = vpop.f32.mrb[23].mxu1 }
 0x4a5   : > { %v1525_v57 = vpack.c.bf16 %v1522_v52, %v1521_v51  ;;  %v1466_v58 = vadd.f32 %v1982_v53, %v1380_v55  ;;  %v1985_v59 = vadd.f32 %v1984_v56, %v1983_v54 }
 0x4a7   : > { %v1515_v61 = vadd.f32 %v2090_v40, %v1466_v58  ;;  %v1469_v62 = vadd.f32 %v1985_v59, %v1385_v60  ;;  %1547 = vrot.lane.b32.xlu0 %v1525_v57, %s2212_s23 }
 0x4a9   : > { %v1518_v63 = vadd.f32 %v2091_v45, %v1469_v62  ;;  %v1523_v0 = vmax.f32 %v1515_v61, 0.0 }
 0x4ab   : > { %v1524_v1 = vmax.f32 %v1518_v63, 0.0  ;;  %1553 = vrot.lane.b32.xlu0 %v1525_v57, %s2214_s11 }
 0x4ad   : > { %v1526_v2 = vpack.c.bf16 %v1524_v1, %v1523_v0 }
 0x4af   : > { %1555 = vrot.lane.b32.xlu0 %v1526_v2, %s2214_s11  ;;  %1549 = vrot.lane.b32.xlu1 %v1526_v2, %s2212_s23 }
 0x4b3   : > { %1559 = vrot.lane.b32.xlu0 %v1525_v57, %s2216_s13  ;;  %1529 = vrot.lane.b32.xlu1 %v1525_v57, %s2210_s19 }
 0x4b7   : > { %1561 = vrot.lane.b32.xlu0 %v1526_v2, %s2216_s13  ;;  %1531 = vrot.lane.b32.xlu1 %v1526_v2, %s2210_s19 }
 0x4bb   : > { %1565 = vrot.lane.b32.xlu0 %v1525_v57, %s2217_s17  ;;  %1535 = vrot.lane.b32.xlu1 %v1525_v57, %s2215_s12 }
 0x4bf   : > { %1567 = vrot.lane.b32.xlu0 %v1526_v2, %s2217_s17  ;;  %1537 = vrot.lane.b32.xlu1 %v1526_v2, %s2215_s12 }
 0x4c3   : > { %1571 = vrot.lane.b32.xlu0 %v1525_v57, %s2218_s18  ;;  %1541 = vrot.lane.b32.xlu1 %v1525_v57, %s2211_s20 }
 0x4c7   : > { %1543 = vrot.lane.b32.xlu1 %v1526_v2, %s2211_s20 }
 0x4cb   : > { %1573 = vrot.lane.b32.xlu1 %v1526_v2, %s2218_s18 }
 0x519   : > { %v1548_v5 = vpop.permute.xlu0 %1547 }
 0x51a   : > { %1990 = vmatprep.subr.bf16.mxu0 %v1548_v5 }
 0x51b   : > { %1991 = vmatpush3.bf16.msra.mxu0 %v1525_v57 }
 0x51d   : > { %v1554_v6 = vpop.permute.xlu0 %1553 }
 0x521   : > { %v1550_v7 = vpop.permute.xlu1 %1549  ;;  %v1556_v8 = vpop.permute.xlu0 %1555 }
 0x522   : > { %1992 = vmatprep.subr.bf16.mxu0 %v1550_v7 }
 0x523   : > { %1993 = vmatpush3.bf16.msra.mxu0 %v1526_v2 }
 0x524   : > { %1994 = vmatprep.subr.bf16.mxu0 %v1554_v6 }
 0x525   : > { %v1530_v9 = vpop.permute.xlu1 %1529  ;;  %v1560_v10 = vpop.permute.xlu0 %1559 }
 0x527   : > { %1995 = vmatpush3.bf16.msra.mxu0 %v1530_v9 }
 0x528   : > { %1996 = vmatprep.subr.bf16.mxu0 %v1556_v8 }
 0x529   : > { %v1532_v11 = vpop.permute.xlu1 %1531  ;;  %v1562_v12 = vpop.permute.xlu0 %1561 }
 0x52b   : > { %1997 = vmatpush3.bf16.msra.mxu0 %v1532_v11 }
 0x52c   : > { %1998 = vmatprep.subr.bf16.mxu0 %v1560_v10 }
 0x52d   : > { %v1536_v13 = vpop.permute.xlu1 %1535  ;;  %v1566_v14 = vpop.permute.xlu0 %1565 }
 0x52f   : > { %1999 = vmatpush3.bf16.msra.mxu0 %v1536_v13 }
 0x530   : > { %2000 = vmatprep.subr.bf16.mxu0 %v1562_v12 }
 0x531   : > { %v1538_v15 = vpop.permute.xlu1 %1537  ;;  %v1568_v16 = vpop.permute.xlu0 %1567 }
 0x533   : > { %2001 = vmatpush3.bf16.msra.mxu0 %v1538_v15 }
 0x534   : > { %2002 = vmatprep.subr.bf16.mxu0 %v1566_v14 }
 0x535   : > { %v1542_v17 = vpop.permute.xlu1 %1541  ;;  %v1572_v18 = vpop.permute.xlu0 %1571 }
 0x536   : > { %2092 = vmatprep.subr.bf16.mxu1 %v1572_v18 }
 0x537   : > { %2003 = vmatpush3.bf16.msra.mxu0 %v1542_v17  ;;  %2093 = vmatpush3.bf16.msra.mxu1 %v1572_v18 }
 0x538   : > { %2004 = vmatprep.subr.bf16.mxu0 %v1568_v16 }
 0x539   : > { %v1544_v19 = vpop.permute.xlu1 %1543 }
 0x53b   : > { %2005 = vmatpush3.bf16.msra.mxu0 %v1544_v19 }
 0x53d   : > { %v1574_v22 = vpop.permute.xlu1 %1573 }
 0x53e   : > { %2094 = vmatprep.subr.bf16.mxu1 %v1574_v22  ;;  %1658 = vmatmul.mubr.bf16.vlgmr.msra.gmra.mrb[8].mxu0 %v2194_v20 }
 0x53f   : > { %2095 = vmatpush3.bf16.msra.mxu1 %v1574_v22  ;;  %1665 = vmatprep.mubr.bf16.mxu0 %v2199_v21 }
 0x542   : > { %2097 = vmatmul.mubr.msk.bf16.vlgmr.msra.gmra.mrb[24].mxu1 %vm1194_vm2, %v2198_v23 }
 0x546   : > { %1666 = vmatmul.mubr.bf16.gmra.mrb[12].mxu0 %v2201_v24 }
 0x611   : > { %v2006_v25 = vpop.f32.mrb[8].mxu0 }
 0x612   : > { %v2007_v26 = vpop.f32.mrb[9].mxu0 }
 0x613   : > { %v2008_v28 = vadd.f32 %v2007_v26, %v2006_v25  ;;  %v2009_v29 = vpop.f32.mrb[10].mxu0 }
 0x614   : > { %v2010_v30 = vpop.f32.mrb[11].mxu0 }
 0x615   : > { %v2011_v32 = vadd.f32 %v2010_v30, %v2009_v29  ;;  %v2098_v33 = vpop.f32.mrb[24].mxu1  ;;  %v1660_v34 = vadd.f32 %v2008_v28, %v1585_v27 }
 0x616   : > { %v1708_v35 = vpop.f32.mrb[25].mxu1 }
 0x617   : > { %v1709_v36 = vadd.f32 %v1708_v35, %v1660_v34  ;;  %v2099_v37 = vpop.f32.mrb[26].mxu1  ;;  %v1663_v38 = vadd.f32 %v2011_v32, %v1586_v31 }
 0x618   : > { %v1711_v39 = vpop.f32.mrb[27].mxu1 }
 0x619   : > { %v1723_v40 = vmax.f32 %v1709_v36, 0.0  ;;  %v1712_v41 = vadd.f32 %v1711_v39, %v1663_v38  ;;  %v2012_v42 = vpop.f32.mrb[12].mxu0 }
 0x61a   : > { %v2013_v44 = vpop.f32.mrb[13].mxu0 }
 0x61b   : > { %1728 = vst.msk [vmem:[%s332_s26] sm:$0xff] %vm1727_vm3, %v1723_v40  ;;  %v1724_v45 = vmax.f32 %v1712_v41, 0.0  ;;  %v2014_v46 = vadd.f32 %v2013_v44, %v2012_v42  ;;  %v2015_v47 = vpop.f32.mrb[14].mxu0 }
 0x61c   : > { %v2016_v49 = vpop.f32.mrb[15].mxu0 }
 0x61d   : > { %1729 = vst.msk [vmem:[%s332_s26 + $0x8] sm:$0xff] %vm1727_vm3, %v1724_v45  ;;  %v1668_v50 = vadd.f32 %v2014_v46, %v1587_v43  ;;  %v2017_v51 = vadd.f32 %v2016_v49, %v2015_v47 }
 0x61f   : > { %v1717_v52 = vadd.f32 %v2098_v33, %v1668_v50  ;;  %v1671_v53 = vadd.f32 %v2017_v51, %v1588_v48 }
 0x621   : > { %v1725_v54 = vmax.f32 %v1717_v52, 0.0  ;;  %v1720_v55 = vadd.f32 %v2099_v37, %v1671_v53 }
 0x623   : > { %1730 = vst.msk [vmem:[%s332_s26 + $0x10] sm:$0xff] %vm1727_vm3, %v1725_v54  ;;  %v1726_v56 = vmax.f32 %v1720_v55, 0.0 }
 0x625   : > { %1731 = vst.msk [vmem:[%s332_s26 + $0x18] sm:$0xff] %vm1727_vm3, %v1726_v56 }
 0x626 PF: > { %s19_s30 = sadd.s32 1, %s2208_s30  }
 0x627   : > { %p16_p4 = scmp.ge.s32.totalorder %s19_s30, 4  }
 0x629   :  { %18 = sbr.rel (!%p16_p4) target bundleno = 1 (0x1), region = 97 }

</bundles_post_ra>
